<compile_context>
chip_gen: v7x
topology: tpu7x:2x2x1
jax: 0.10.0
libtpu: 0.0.40
codegen_flags: <defaults>
</compile_context>

<pallas_src>
import jax
import jax.numpy as jnp
from jax.experimental import pallas as pl
from jax.experimental.pallas import tpu as pltpu


def fusion_kernel(q_ref, a_ref, o_ref):
    # q_ref: (TN, D)   float   -- tile of question embeddings
    # a_ref: (TN, 1)   int32   -- tile of answer indices (expected {0, 1})
    # o_ref: (TN, 2D)  float
    q = q_ref[...]                                    # (TN, D)
    sel = a_ref[...] != 0                             # (TN, 1) bool, lane-broadcast
    left = jnp.where(sel, q, jnp.zeros((), q.dtype))  # ans!=0 -> q, else 0
    right = q - left                                  # complementary half (exact)
    D = q.shape[-1]
    # Two static-slice stores; no concatenated temp, DMA writeback is the same
    # contiguous (TN, 2D) block either way.
    o_ref[:, :D] = left
    o_ref[:, D:] = right


def _round_up(x: int, m: int) -> int:
    return ((x + m - 1) // m) * m


def fusion_module(ques_emb: jax.Array, pad_answer: jax.Array,
                  *, tile_rows: int | None = None) -> jax.Array:
    """ques_emb: (..., D) float; pad_answer: (...,) int in {0,1}.

    Returns (..., 2*D), identical to Fusion_Module.forward.
    NOTE: any nonzero pad_answer is treated as 1 (matches the structural
    transform table for {0, 1}).
    """
    *lead, D = ques_emb.shape
    N = 1
    for s in lead:
        N *= s
    N = max(N, 1)

    q_flat = ques_emb.reshape(N, D)
    a_flat = pad_answer.reshape(N, 1).astype(jnp.int32)

    itemsize = jnp.dtype(ques_emb.dtype).itemsize
    sublane = max(8, 32 // itemsize)   # 8 for f32, 16 for bf16

    if tile_rows is None:
        # Per-row VMEM bytes per pipeline buffer: q tile + 2D out tile + the
        # lane-padded (x128) int32 answer column.
        row_bytes = 3 * D * itemsize + 128 * 4
        vmem_budget = 8 * 1024 * 1024            # per-step, double-buffered target
        tile_rows = vmem_budget // (2 * row_bytes)
        tile_rows = min(2048, tile_rows)
        # Keep the grid >= ~8 steps so the "parallel" axis can be split across
        # TensorCores (v7x megacore) instead of collapsing to a single step.
        min_grid = 8
        tile_rows = min(tile_rows, _round_up(pl.cdiv(N, min_grid), sublane))
    tile_rows = max(sublane, (int(tile_rows) // sublane) * sublane)

    grid = (pl.cdiv(N, tile_rows),)   # ragged last block is clipped on writeback

    bytes_accessed = N * D * itemsize * 3 + N * 4   # read q, write 2*q, read ans

    out_flat = pl.pallas_call(
        fusion_kernel,
        out_shape=jax.ShapeDtypeStruct((N, 2 * D), ques_emb.dtype),
        grid_spec=pl.GridSpec(
            grid=grid,
            in_specs=[
                pl.BlockSpec((tile_rows, D), lambda i: (i, 0)),
                pl.BlockSpec((tile_rows, 1), lambda i: (i, 0)),
            ],
            out_specs=pl.BlockSpec((tile_rows, 2 * D), lambda i: (i, 0)),
        ),
        compiler_params=pltpu.CompilerParams(
            dimension_semantics=("parallel",),
            vmem_limit_bytes=32 * 1024 * 1024,
        ),
        cost_estimate=pl.CostEstimate(
            flops=0, transcendentals=0, bytes_accessed=bytes_accessed),
    )(q_flat, a_flat)

    return out_flat.reshape(*lead, 2 * D)


def make_transform_matrix(emb_dim: int, dtype=jnp.float32) -> jax.Array:
    tm = jnp.zeros((2, 2 * emb_dim), dtype=dtype)
    tm = tm.at[0, emb_dim:].set(1.0)
    tm = tm.at[1, :emb_dim].set(1.0)
    return tm


def fusion_module_ref(ques_emb, pad_answer, transform_matrix):
    """Pure-JAX reference mirroring the PyTorch forward."""
    ques2 = jnp.concatenate((ques_emb, ques_emb), axis=-1)
    answer_emb = jnp.take(transform_matrix, pad_answer, axis=0)
    return ques2 * answer_emb


if __name__ == "__main__":
    key = jax.random.PRNGKey(0)
    k_q, k_a, k_q2, k_a2 = jax.random.split(key, 4)

    # Test 1: lane-dense output (2*D = 128), N divisible by the tile.
    B, S, D = 2, 8, 64
    ques_emb = jax.random.normal(k_q, (B, S, D), dtype=jnp.float32)
    pad_answer = jax.random.randint(k_a, (B, S), 0, 2, dtype=jnp.int32)
    out = jax.block_until_ready(fusion_module(ques_emb, pad_answer))
    ref = fusion_module_ref(ques_emb, pad_answer, make_transform_matrix(D))
    assert out.shape == (B, S, 2 * D)
    assert jnp.allclose(out, ref, atol=1e-6, rtol=1e-6)

    # Test 2: N not a multiple of tile_rows -> exercises ragged last-block clip.
    B2, S2, D2 = 3, 5, 32
    ques_emb2 = jax.random.normal(k_q2, (B2, S2, D2), dtype=jnp.float32)
    pad_answer2 = jax.random.randint(k_a2, (B2, S2), 0, 2, dtype=jnp.int32)
    out2 = jax.block_until_ready(fusion_module(ques_emb2, pad_answer2))
    ref2 = fusion_module_ref(ques_emb2, pad_answer2, make_transform_matrix(D2))
    assert out2.shape == (B2, S2, 2 * D2)
    assert jnp.allclose(out2, ref2, atol=1e-6, rtol=1e-6)

    print("KERNEL_OK")
</pallas_src>

<mosaic_0001>
module attributes {stable_mosaic.version = 11 : i64} {
  func.func @fusion_kernel(%arg0: i32, %arg1: memref<8x64xf32, #tpu.memory_space<vmem>>, %arg2: memref<8x1xi32, #tpu.memory_space<vmem>>, %arg3: memref<8x128xf32, #tpu.memory_space<vmem>>) attributes {dimension_semantics = [#tpu.dimension_semantics<parallel>], iteration_bounds = array<i64: 2>, scalar_prefetch = 0 : i64, scratch_operands = 0 : i64, tpu.core_type = #tpu.core_type<tc>, window_params = [{transform_indices = @transform_0, window_bounds = array<i64: 8, 64>}, {transform_indices = @transform_1, window_bounds = array<i64: 8, 1>}, {transform_indices = @transform_2, window_bounds = array<i64: 8, 128>}]} {
    %c0 = arith.constant 0 : index
    %c0_0 = arith.constant 0 : index
    %0 = vector.load %arg1[%c0, %c0_0] : memref<8x64xf32, #tpu.memory_space<vmem>>, vector<8x64xf32>
    %c0_1 = arith.constant 0 : index
    %c0_2 = arith.constant 0 : index
    %1 = vector.load %arg2[%c0_1, %c0_2] : memref<8x1xi32, #tpu.memory_space<vmem>>, vector<8x1xi32>
    %c0_i32 = arith.constant 0 : i32
    %2 = vector.broadcast %c0_i32 : i32 to vector<8x1xi32>
    %3 = arith.cmpi ne, %1, %2 : vector<8x1xi32>
    %cst = arith.constant 0.000000e+00 : f32
    %4 = vector.shape_cast %3 : vector<8x1xi1> to vector<8x1xi1>
    %5 = vector.broadcast %4 : vector<8x1xi1> to vector<8x64xi1>
    %6 = vector.broadcast %cst : f32 to vector<8x64xf32>
    %7 = arith.select %5, %0, %6 : vector<8x64xi1>, vector<8x64xf32>
    %8 = arith.subf %0, %7 : vector<8x64xf32>
    %c0_3 = arith.constant 0 : index
    %c0_4 = arith.constant 0 : index
    %9 = vector.load %arg3[%c0_3, %c0_4] : memref<8x128xf32, #tpu.memory_space<vmem>>, vector<8x64xf32>
    tpu.vector_store %arg3[%c0_3, %c0_4], %7 {strides = array<i32>} : memref<8x128xf32, #tpu.memory_space<vmem>>, vector<8x64xf32>,
    %c0_5 = arith.constant 0 : index
    %c64 = arith.constant 64 : index
    %10 = vector.load %arg3[%c0_5, %c64] : memref<8x128xf32, #tpu.memory_space<vmem>>, vector<8x64xf32>
    tpu.vector_store %arg3[%c0_5, %c64], %8 {strides = array<i32>} : memref<8x128xf32, #tpu.memory_space<vmem>>, vector<8x64xf32>,
    return
  }
  func.func @transform_0(%arg0: i32) -> (i32, i32) {
    %c0_i32 = arith.constant 0 : i32
    %c0_i32_0 = arith.constant 0 : i32
    return %arg0, %c0_i32 : i32, i32
  }
  func.func @transform_1(%arg0: i32) -> (i32, i32) {
    %c0_i32 = arith.constant 0 : i32
    %c0_i32_0 = arith.constant 0 : i32
    return %arg0, %c0_i32 : i32, i32
  }
  func.func @transform_2(%arg0: i32) -> (i32, i32) {
    %c0_i32 = arith.constant 0 : i32
    %c0_i32_0 = arith.constant 0 : i32
    return %arg0, %c0_i32 : i32, i32
  }
}

</mosaic_0001>

<bundles_post_ra>
// kernel: tpu_custom_call.1
= control target key start
LH: loop header
LB: loop body
LE: loop exit
PB: predicated region body
PF: predicated region fallthrough
CT: control target
= control target key end

     0   :  { %7 = vsyncpa [#allocation3], 0  ;;  %s497_s0 = inlined_call_operand.vmem [shape: f32[16,64], index: 0, kind: input, shape index: {}]   ;;  %s498_s1 = inlined_call_operand.vmem [shape: s32[16,1], index: 1, kind: input, shape index: {}]   ;;  %s499_s2 = inlined_call_operand.hbm [shape: f32[16,128], index: 2, kind: output, shape index: {}]  }
   0x1   :  { %9 = vsyncpa [#allocation3 + $0x1], 0  ;;  %s394_s9 = smov 0   ;;  %s396_s10 = smov 0  }
   0x2   :  { %s398_s11 = smov 0   ;;  %s400_s12 = smov 0  }
   0x3 LB: > { %s415_s13 = sadd.s32 4294967295, %s374_s12   ;;  %s259_s14 = sadd.s32 4294967294, %s374_s12   ;;  %s374_s12 = sphi %s400_s12, %s505_s12   ;;  %s370_s11 = sphi %s398_s11, %s504_s11   ;;  %s366_s10 = sphi %s396_s10, %s503_s10   ;;  %s362_s9 = sphi %s394_s9, %s502_s9  }
   0x4   : > { %s419_s15 = sadd.s32 1, %s374_s12   ;;  %s74_s16 = sadd.s32 1, %s370_s11 }
   0x5   : > { %s71_s17 = ssub.s32 %s374_s12, %s419_s15  ;;  %p84_p0 = scmp.ne.s32.totalorder %s370_s11, %s366_s10 }
   0x6   : > { %p72_p1 = scmp.eq.s32.totalorder %s71_s17, 0  ;;  %p85_p2 = scmp.eq.s32.totalorder %s415_s13, 1 }
   0x7   : > { %p90_p3 = scmp.ne.s32.totalorder %s366_s10, %s362_s9  ;;  %p91_p4 = scmp.eq.s32.totalorder %s259_s14, 1 }
   0x8   : > { %s430_s18 = scalar_select %p72_p1, %s370_s11, %s74_s16  }
   0x9   : > { %p432_p5 = por %p85_p2, %p84_p0  ;;  %p436_p6 = por %p91_p4, %p90_p3 }
   0xa   : > { %p262_p7 = scmp.ge.s32.totalorder %s374_s12, 1  ;;  %p123_p8 = scmp.lt.s32.totalorder %s374_s12, 3 }
   0xc   : > { %p124_p9 = pnand %p262_p7, %p123_p8 }
   0xd   : > { %p148_p10 = scmp.lt.s32.totalorder (!%p124_p9), %s415_s13, 1  ;;  %v376_v0 = vmov (!%p124_p9), 0   ;;  %s145_s26 = sand.u32 (!%p124_p9), 1, %s366_s10   ;;  %vm166_vm1 = vcmask (!%p124_p9), 523264   ;;  %vm172_vm3 = vcmask (!%p124_p9), 1048064  }
   0xe   : > { %127 = sbr.rel (%p124_p9) target bundleno = 289 (0x121), region = 28  ;;  %311 = vset.pattern.permute.xlu0 (!%p124_p9), %v376_v0  ;;  %s263_s30 = sshll.u32 (!%p124_p9), %s145_s26, 3 }
   0xf   : > { %s147_s3 = scalar_lea.vmem (!%p124_p9), [#allocation2], %s263_s30  ;;  %s377_s4 = smov (!%p124_p9), 64  }
  0x10   : > { %s267_s5 = sshll.u32 (!%p124_p9), %s415_s13, 7  ;;  %s188_s6 = sshll.u32 (!%p124_p9), %s147_s3, 4  ;;  %s457_s6 = int_to_ptr.vmem [resolvable:$true] %s188_s6 }
  0x11   : > { %s455_s14 = scalar_lea.hbm (!%p124_p9), %s499_s2, %s267_s5  ;;  %s175_s16 = scalar_lea.sflag (!%p124_p9), [#allocation3], %s145_s26 }
  0x12   : > { %s312_s17 = scalar_lea.vmem (!%p124_p9), %s457_s6, 128 }
  0x13   : > { %p313_p11 = scmp.ne.s32.totalorder (!%p124_p9), %s457_s6, %s312_s17 }
  0x15   : > { %s149_s21 = scalar_select %p148_p10, %s415_s13, 1 }
  0x16   : > { %p314_p12 = pnand %p313_p11, %p432_p5  ;;  %s378_s13 = smov [#allocation2]  }
  0x17   : > { %s264_s22 = sshll.u32 %s149_s21, 3  ;;  %s316_s21 = sshll.u32 %s378_s13, 4  ;;  %s317_s21 = int_to_ptr.vmem [resolvable:$false] %s316_s21 }
  0x18   : > { %s155_s25 = scalar_lea.vmem %s498_s1, %s264_s22  ;;  %s151_s29 = scalar_lea.vmem %s497_s0, %s264_s22 }
  0x19   : > { %v157_v1 = vld [vmem:[%s155_s25] sm:$0xff]  ;;  %p315_p13 = pneg %p314_p12  ;;  %s318_s22 = scalar_lea.vmem %s317_s21, 256 }
  0x1a   : > { %vm158_vm0 = vcmp.ne.s32.totalorder %v157_v1, 0  ;;  %v156_v3 = vld [vmem:[%s151_s29] sm:$0xff]  ;;  %p319_p0 = scmp.lt.s32.totalorder %s457_s6, %s317_s21  ;;  %p320_p1 = scmp.lt.s32.totalorder %s318_s22, %s312_s17 }
  0x1b   : > { %v159_v2 = vsel %vm158_vm0, 1, %v376_v0 }
  0x1c   : > { %161 = vperm.xlu0 %311, %v159_v2   ;;  %p321_p2 = por %p320_p1, %p319_p0 }
  0x1e   : > { %p322_p3 = pnand %p321_p2, %p315_p13 }
  0x9b   : > { %v162_v4 = vpop.permute.xlu0 %161 }
  0x9c   : > { %vm163_vm2 = vcmp.eq.s32.totalorder %v162_v4, 1 }
  0x9d   : > { %v164_v5 = vsel %vm163_vm2, %v156_v3, 0.0 }
  0x9e   : > { %v165_v6 = vsub.f32 %v156_v3, %v164_v5  ;;  %167 = vst.msk [vmem:[%s147_s3] sm:$0xff] %vm166_vm1, %v164_v5 }
  0xa0   : > { %169 = vrot.lane.b32.xlu0 %v165_v6, %s377_s4 }
 0x112   : > { %v170_v7 = vpop.permute.xlu0 %169 }
 0x113   : > { %173 = vst.msk [vmem:[%s147_s3] sm:$0xff] %vm172_vm3, %v170_v7 }
 0x114   : > { %325 = shalt.err (!%p322_p3)
}
 0x115   : > { %s326_s23 = scalar_lea.hbm %s455_s14, 128  ;;  %s330_s26 = scalar_lea.hbm %s499_s2, 256 }
 0x116   : > { %p327_p4 = scmp.ne.s32.totalorder %s455_s14, %s326_s23  ;;  %p331_p9 = scmp.lt.u32.totalorder %s455_s14, %s499_s2 }
 0x117   : > { %p332_p10 = scmp.lt.u32.totalorder %s330_s26, %s326_s23  ;;  %p334_p12 = scmp.lt.u32.totalorder %s326_s23, %s455_s14 }
 0x118   : > { %p328_p7 = pnand %p327_p4, %p432_p5 }
 0x119   : > { %p333_p11 = por %p332_p10, %p331_p9 }
 0x11a   : > { %p329_p8 = pneg %p328_p7 }
 0x11b   : > { %p335_p13 = por %p334_p12, %p333_p11 }
 0x11d   : > { %p336_p0 = pnand %p335_p13, %p329_p8 }
 0x11f   : > { %339 = shalt.err (!%p336_p0)
}
 0x120   : > { %270 = dma.vmem_to_hbm [thread:$0]  (%p432_p5), %s457_s6, 128, %s455_s14, %s175_s16  }
 0x121 PF: > { %p276_p1 = scmp.ge.s32.totalorder %s374_s12, 2  ;;  %s200_s29 = sand.u32 1, %s362_s9  }
 0x122   : > { %s201_s30 = scalar_lea.sflag [#allocation3], %s200_s29 }
 0x123   : > { %p273_p2 = pnand %p276_p1, %p436_p6 }
 0x125   : > { %357 = dma.done.wait (!%p273_p2), %s201_s30, 128  }
 0x126   : > { %359 = vsyncadd (!%p273_p2), %s201_s30, 4294967168  ;;  %p12_p3 = scmp.ge.s32.totalorder %s419_s15, 4   ;;  %s502_s9 = smov %s366_s10 }
 0x127   : > { %s503_s10 = smov %s370_s11  ;;  %s504_s11 = smov %s430_s18 }
 0x128   : > { %s505_s12 = smov %s419_s15  ;;  %14 = sbr.rel (!%p12_p3) target bundleno = 3 (0x3), region = 66 }
 0x12f   :  { %206 = vsyncpa [#allocation3], 1 }
 0x130   :  { %208 = vsyncpa [#allocation3 + $0x1], 1 }

</bundles_post_ra>
